<compile_context>
chip_gen: v6e
topology: v6e:2x2x1
jax: 0.10.0
libtpu: 0.0.40
codegen_flags: <defaults>
</compile_context>

<pallas_src>
import functools

import jax
import jax.numpy as jnp
from jax import lax
from jax.experimental import pallas as pl
from jax.experimental.pallas import tpu as pltpu


def _sigmoid(x):
    # exp runs on the EUP; pl.reciprocal keeps the divide off the VALU slot.
    return pl.reciprocal(1.0 + jnp.exp(-x), approx=False)


def _mlp_attn(avg_f32, w1, w2):
    # Linear(C->H, no bias) -> ReLU -> Linear(H->C, no bias) -> Sigmoid.
    # Weights stay in their native dtype (native bf16 MXU path with f32 accumulation);
    # only the tiny activations are cast when needed — no in-kernel weight upcast.
    lhs1 = avg_f32 if w1.dtype == jnp.float32 else avg_f32.astype(w1.dtype)
    h = lax.dot_general(lhs1, w1, dimension_numbers=(((1,), (1,)), ((), ())),
                        preferred_element_type=jnp.float32)            # (Bt, H)
    h = jnp.maximum(h, 0.0)
    lhs2 = h if w2.dtype == jnp.float32 else h.astype(w2.dtype)
    logits = lax.dot_general(lhs2, w2, dimension_numbers=(((1,), (1,)), ((), ())),
                             preferred_element_type=jnp.float32)       # (Bt, C)
    return _sigmoid(logits)


def _vmem_budget_bytes():
    cap = 64 * 1024 * 1024  # conservative fallback (v7x per-TC VMEM)
    try:
        info = pltpu.get_tpu_info()
        cap = int(getattr(info, "vmem_capacity_bytes", cap))
    except Exception:
        pass
    return int(cap * 3 // 4)  # leave headroom for the compiler


def _round_t_tile(tile, t):
    # Lane-dense T tiles: multiple of 128, or the full extent when it covers T.
    if tile >= t:
        return t
    return max(128, (tile // 128) * 128)


# ----------------------------------------------------------------------------
# Fused single-pass path: grid over B ("parallel"), each batch tile is independent.
# ----------------------------------------------------------------------------
def _fused_kernel(x_ref, w1_ref, w2_ref, o_ref):
    x = x_ref[...]                                        # (bt, C, T), input dtype
    # AdaptiveAvgPool1d(1): mean over T, accumulated in f32 (no f32 copy of the slab).
    avg = jnp.mean(x, axis=-1, dtype=jnp.float32)         # (bt, C)
    attn = _mlp_attn(avg, w1_ref[...], w2_ref[...]).astype(x.dtype)   # (bt, C)
    # Gate in the input dtype; broadcast attention over the time axis.
    o_ref[...] = x * attn[:, :, None]


def _fused_call(x, w_fc1, w_fc2, b_tile, vmem_limit, n_buf):
    b, c, t = x.shape
    h = w_fc1.shape[0]
    if n_buf >= 2:
        x_in_spec = pl.BlockSpec((b_tile, c, t), lambda i: (i, 0, 0))
        x_out_spec = pl.BlockSpec((b_tile, c, t), lambda i: (i, 0, 0))
    else:
        # Near-budget slabs: drop double buffering so the 2x-traffic single pass still fits.
        x_in_spec = pl.BlockSpec((b_tile, c, t), lambda i: (i, 0, 0),
                                 pipeline_mode=pl.Buffered(1))
        x_out_spec = pl.BlockSpec((b_tile, c, t), lambda i: (i, 0, 0),
                                  pipeline_mode=pl.Buffered(1))
    return pl.pallas_call(
        _fused_kernel,
        out_shape=jax.ShapeDtypeStruct((b, c, t), x.dtype),
        grid_spec=pltpu.PrefetchScalarGridSpec(
            num_scalar_prefetch=0,
            grid=(pl.cdiv(b, b_tile),),
            in_specs=[
                x_in_spec,
                pl.BlockSpec((h, c), lambda i: (0, 0)),
                pl.BlockSpec((c, h), lambda i: (0, 0)),
            ],
            out_specs=x_out_spec,
        ),
        compiler_params=pltpu.CompilerParams(
            dimension_semantics=("parallel",),
            vmem_limit_bytes=int(vmem_limit),
        ),
    )(x, w_fc1, w_fc2)


# ----------------------------------------------------------------------------
# Tiled two-pass fallback (huge C*T): reduction sweep + parallel gating sweep.
# ----------------------------------------------------------------------------
def _attn_tiled_kernel(x_ref, w1_ref, w2_ref, attn_ref, sum_ref, *,
                       t_total, t_tile, needs_mask):
    t_idx = pl.program_id(1)
    nt = pl.num_programs(1)

    @pl.when(t_idx == 0)
    def _():
        sum_ref[...] = jnp.zeros_like(sum_ref)

    x = x_ref[...]                                                  # (bt, C, tt)
    if needs_mask:
        # Tail-only masking: steady-state tiles are a plain f32-accumulated sum;
        # only the last (partial) tile pays for the iota/compare/select.
        @pl.when(t_idx < nt - 1)
        def _():
            sum_ref[...] += jnp.sum(x, axis=-1, dtype=jnp.float32)

        @pl.when(t_idx == nt - 1)
        def _():
            col = lax.broadcasted_iota(jnp.int32, x.shape, 2) + t_idx * t_tile
            xm = jnp.where(col < t_total, x.astype(jnp.float32), 0.0)
            sum_ref[...] += jnp.sum(xm, axis=-1)
    else:
        sum_ref[...] += jnp.sum(x, axis=-1, dtype=jnp.float32)

    @pl.when(t_idx == nt - 1)
    def _():
        avg = sum_ref[...] * (1.0 / float(t_total))                 # (bt, C) f32
        attn_ref[...] = _mlp_attn(avg, w1_ref[...], w2_ref[...]).astype(attn_ref.dtype)


def _gate_tiled_kernel(x_ref, attn_ref, o_ref):
    x = x_ref[...]              # (bt, C, tt) input dtype
    a = attn_ref[...]           # (bt, C) already in input dtype
    o_ref[...] = x * a[:, :, None]


def _tiled_call(x, w_fc1, w_fc2, b_tile1, t_tile1, b_tile2, t_tile2, vmem_limit):
    b, c, t = x.shape
    h = w_fc1.shape[0]

    # Pass 1: per-channel attention. Leading batch axis "parallel" (v7x megacore),
    # trailing T axis "arbitrary" (sequential — required by the sum_ref accumulator).
    nb1 = pl.cdiv(b, b_tile1)
    nt1 = pl.cdiv(t, t_tile1)
    attn = pl.pallas_call(
        functools.partial(_attn_tiled_kernel, t_total=t, t_tile=t_tile1,
                          needs_mask=(t % t_tile1 != 0)),
        out_shape=jax.ShapeDtypeStruct((b, c), x.dtype),
        grid_spec=pltpu.PrefetchScalarGridSpec(
            num_scalar_prefetch=0,
            grid=(nb1, nt1),
            in_specs=[
                pl.BlockSpec((b_tile1, c, t_tile1), lambda bi, ti: (bi, 0, ti)),
                pl.BlockSpec((h, c), lambda bi, ti: (0, 0)),
                pl.BlockSpec((c, h), lambda bi, ti: (0, 0)),
            ],
            out_specs=pl.BlockSpec((b_tile1, c), lambda bi, ti: (bi, 0)),
            scratch_shapes=[pltpu.VMEM((b_tile1, c), jnp.float32)],
        ),
        compiler_params=pltpu.CompilerParams(
            dimension_semantics=("parallel", "arbitrary"),
            vmem_limit_bytes=int(vmem_limit),
        ),
    )(x, w_fc1, w_fc2)

    # Pass 2: elementwise gating sweep, fully parallel.
    nb2 = pl.cdiv(b, b_tile2)
    nt2 = pl.cdiv(t, t_tile2)
    out = pl.pallas_call(
        _gate_tiled_kernel,
        out_shape=jax.ShapeDtypeStruct((b, c, t), x.dtype),
        grid_spec=pltpu.PrefetchScalarGridSpec(
            num_scalar_prefetch=0,
            grid=(nb2, nt2),
            in_specs=[
                pl.BlockSpec((b_tile2, c, t_tile2), lambda bi, ti: (bi, 0, ti)),
                pl.BlockSpec((b_tile2, c), lambda bi, ti: (bi, 0)),
            ],
            out_specs=pl.BlockSpec((b_tile2, c, t_tile2), lambda bi, ti: (bi, 0, ti)),
        ),
        compiler_params=pltpu.CompilerParams(
            dimension_semantics=("parallel", "parallel"),
            vmem_limit_bytes=int(vmem_limit),
        ),
    )(x, attn)
    return out


# ----------------------------------------------------------------------------
# Public wrapper
# ----------------------------------------------------------------------------
def channel_attention(x, w_fc1, w_fc2, *, t_tile=None):
    """x: (B, C, T); w_fc1: (H, C) = Linear(C, H).weight; w_fc2: (C, H) = Linear(H, C).weight.

    Note: the sigmoid gate is cast to x.dtype before the multiply (matches _reference;
    for bf16 inputs this quantizes the gate vs a float32 PyTorch module).
    """
    b, c, t = x.shape
    h = w_fc1.shape[0]
    assert w_fc1.shape == (h, c) and w_fc2.shape == (c, h)

    itemsize = jnp.dtype(x.dtype).itemsize
    budget = _vmem_budget_bytes()
    w_bytes = 2 * (w_fc1.size * jnp.dtype(w_fc1.dtype).itemsize
                   + w_fc2.size * jnp.dtype(w_fc2.dtype).itemsize)   # double-buffered weights
    avail = max(int(budget) - int(w_bytes), 0)
    slab_per_b = c * t * itemsize            # one batch row of x (== one output row)

    if t_tile is None:
        if avail >= 4 * slab_per_b:
            # Pipelined fused path: double-buffered input + output batch tiles.
            b_tile = int(min(b, max(1, avail // (4 * slab_per_b))))
            if b > 1:
                # Prefer several grid steps: pipeline depth + v7x megacore sharding.
                target_steps = 8 if b >= 8 else b
                b_tile = max(1, min(b_tile, pl.cdiv(b, target_steps)))
            return _fused_call(x, w_fc1, w_fc2, b_tile, budget, n_buf=2)
        if avail >= 2 * slab_per_b:
            # Single-buffered fused path: keeps single-pass (2x slab) HBM traffic when
            # double-buffered tiles would not fit (matters on v7x's 64 MiB VMEM).
            return _fused_call(x, w_fc1, w_fc2, 1, budget, n_buf=1)

    # ---- two-pass tiled fallback (huge C*T, or t_tile forced by the caller) ----
    # Sublane-aligned batch tiles let the batch grid axis be "parallel" (v7x megacore)
    # while keeping the (B, C) attention blocks layout-friendly.
    b_tile1 = 8 if (b % 8 == 0) else b
    b_tile2 = 8 if (b % 8 == 0) else b

    if t_tile is not None:
        t1 = t2 = _round_t_tile(int(t_tile), t)
    else:
        # Pass 1 has no output slab: per-lane VMEM is 2x (input double buffer only),
        # so its T tile can be ~2x wider than pass 2's.
        lane_bytes1 = 2 * b_tile1 * c * itemsize
        lane_bytes2 = 4 * b_tile2 * c * itemsize
        t1 = _round_t_tile(max(128, (avail // max(lane_bytes1, 1)) // 128 * 128), t)
        t2 = _round_t_tile(max(128, (avail // max(lane_bytes2, 1)) // 128 * 128), t)
    # TODO(synk): if B*C is so large that even a 128-wide T tile overflows VMEM, flatten
    #             (B, C, T) -> (B*C, T) and tile the row axis (also gives v7x parallelism
    #             when B == 1); the tiny MLP can then run on the (B, C) means in plain XLA.
    return _tiled_call(x, w_fc1, w_fc2, b_tile1, t1, b_tile2, t2, budget)


def _reference(x, w_fc1, w_fc2):
    avg = jnp.mean(x.astype(jnp.float32), axis=-1)            # (B, C)
    h = jnp.maximum(avg @ w_fc1.T.astype(jnp.float32), 0.0)   # (B, H)
    attn = jax.nn.sigmoid(h @ w_fc2.T.astype(jnp.float32))    # (B, C)
    return (x * attn[:, :, None].astype(x.dtype)).astype(x.dtype)


if __name__ == "__main__":
    B, C, T = 2, 32, 16
    reduction = 16
    H = max(1, C // reduction)  # 2

    key = jax.random.PRNGKey(0)
    k_x, k_w1, k_w2, k_x2 = jax.random.split(key, 4)

    x = jax.random.normal(k_x, (B, C, T), dtype=jnp.float32)
    # nn.Linear weight shapes are (out_features, in_features).
    w_fc1 = 0.1 * jax.random.normal(k_w1, (H, C), dtype=jnp.float32)   # Linear(C -> H)
    w_fc2 = 0.1 * jax.random.normal(k_w2, (C, H), dtype=jnp.float32)   # Linear(H -> C)

    # Fused batch-tiled (single-pass, "parallel" batch grid) path.
    out = jax.block_until_ready(channel_attention(x, w_fc1, w_fc2))
    ref = _reference(x, w_fc1, w_fc2)
    assert out.shape == (B, C, T)
    assert jnp.allclose(out, ref, atol=1e-5, rtol=1e-5), "fused path mismatch vs reference"

    # Tiled (large-T / v7x VMEM-aware) path: lane-dense 128-wide T tiles, tail-only masking.
    T2 = 192
    x2 = jax.random.normal(k_x2, (B, C, T2), dtype=jnp.float32)
    out2 = jax.block_until_ready(channel_attention(x2, w_fc1, w_fc2, t_tile=128))
    ref2 = _reference(x2, w_fc1, w_fc2)
    assert out2.shape == (B, C, T2)
    assert jnp.allclose(out2, ref2, atol=1e-4, rtol=1e-4), "tiled path mismatch vs reference"

    print("KERNEL_OK")
</pallas_src>

<mosaic_0001>
module attributes {stable_mosaic.version = 11 : i64} {
  func.func @_fused_kernel(%arg0: i32, %arg1: memref<1x32x16xf32, #tpu.memory_space<vmem>>, %arg2: memref<2x32xf32, #tpu.memory_space<vmem>>, %arg3: memref<32x2xf32, #tpu.memory_space<vmem>>, %arg4: memref<1x32x16xf32, #tpu.memory_space<vmem>>) attributes {dimension_semantics = [#tpu.dimension_semantics<parallel>], iteration_bounds = array<i64: 2>, scalar_prefetch = 0 : i64, scratch_operands = 0 : i64, tpu.core_type = #tpu.core_type<tc>, window_params = [{transform_indices = @transform_0, window_bounds = array<i64: 1, 32, 16>}, {pipeline_mode = #tpu.pipeline_mode<synchronous>, transform_indices = @transform_1, window_bounds = array<i64: 2, 32>}, {pipeline_mode = #tpu.pipeline_mode<synchronous>, transform_indices = @transform_2, window_bounds = array<i64: 32, 2>}, {transform_indices = @transform_3, window_bounds = array<i64: 1, 32, 16>}]} {
    %c0 = arith.constant 0 : index
    %c0_0 = arith.constant 0 : index
    %c0_1 = arith.constant 0 : index
    %0 = vector.load %arg1[%c0, %c0_0, %c0_1] : memref<1x32x16xf32, #tpu.memory_space<vmem>>, vector<1x32x16xf32>
    %cst = arith.constant dense<0.000000e+00> : vector<1x32xf32>
    %1 = vector.multi_reduction <add>, %0, %cst [2] : vector<1x32x16xf32> to vector<1x32xf32>
    %cst_2 = arith.constant 1.600000e+01 : f32
    %2 = vector.broadcast %cst_2 : f32 to vector<1x32xf32>
    %3 = arith.divf %1, %2 : vector<1x32xf32>
    %c0_3 = arith.constant 0 : index
    %c0_4 = arith.constant 0 : index
    %4 = vector.load %arg2[%c0_3, %c0_4] : memref<2x32xf32, #tpu.memory_space<vmem>>, vector<2x32xf32>
    %c0_5 = arith.constant 0 : index
    %c0_6 = arith.constant 0 : index
    %5 = vector.load %arg3[%c0_5, %c0_6] : memref<32x2xf32, #tpu.memory_space<vmem>>, vector<32x2xf32>
    %cst_7 = arith.constant dense<0.000000e+00> : vector<1x2xf32>
    %6 = tpu.matmul %3, %4, %cst_7 {dimension_numbers = #tpu.dot_dimension_numbers<[1], [1], [0], [0], [0, 0, 1, 0], [], []>} : vector<1x32xf32>, vector<2x32xf32>, vector<1x2xf32> -> vector<1x2xf32>
    %cst_8 = arith.constant 0.000000e+00 : f32
    %7 = vector.broadcast %cst_8 : f32 to vector<1x2xf32>
    %8 = arith.maximumf %6, %7 : vector<1x2xf32>
    %cst_9 = arith.constant dense<0.000000e+00> : vector<1x32xf32>
    %9 = tpu.matmul %8, %5, %cst_9 {dimension_numbers = #tpu.dot_dimension_numbers<[1], [1], [0], [0], [0, 0, 1, 0], [], []>} : vector<1x2xf32>, vector<32x2xf32>, vector<1x32xf32> -> vector<1x32xf32>
    %cst_10 = arith.constant 0.000000e+00 : f32
    %10 = vector.broadcast %cst_10 : f32 to vector<1x32xf32>
    %11 = arith.subf %10, %9 : vector<1x32xf32>
    %12 = math.exp %11 : vector<1x32xf32>
    %cst_11 = arith.constant 1.000000e+00 : f32
    %13 = vector.broadcast %cst_11 : f32 to vector<1x32xf32>
    %14 = arith.addf %13, %12 : vector<1x32xf32>
    %15 = tpu.reciprocal %14 : vector<1x32xf32> -> vector<1x32xf32>
    %16 = vector.shape_cast %15 : vector<1x32xf32> to vector<1x32x1xf32>
    %17 = vector.broadcast %16 : vector<1x32x1xf32> to vector<1x32x16xf32>
    %18 = arith.mulf %0, %17 : vector<1x32x16xf32>
    %c0_12 = arith.constant 0 : index
    %c0_13 = arith.constant 0 : index
    %c0_14 = arith.constant 0 : index
    %19 = vector.load %arg4[%c0_12, %c0_13, %c0_14] : memref<1x32x16xf32, #tpu.memory_space<vmem>>, vector<1x32x16xf32>
    tpu.vector_store %arg4[%c0_12, %c0_13, %c0_14], %18 {strides = array<i32>} : memref<1x32x16xf32, #tpu.memory_space<vmem>>, vector<1x32x16xf32>,
    return
  }
  func.func @transform_0(%arg0: i32) -> (i32, i32, i32) {
    %c0_i32 = arith.constant 0 : i32
    %c0_i32_0 = arith.constant 0 : i32
    %c0_i32_1 = arith.constant 0 : i32
    return %arg0, %c0_i32, %c0_i32_0 : i32, i32, i32
  }
  func.func @transform_1(%arg0: i32) -> (i32, i32) {
    %c0_i32 = arith.constant 0 : i32
    %c0_i32_0 = arith.constant 0 : i32
    %c0_i32_1 = arith.constant 0 : i32
    return %c0_i32, %c0_i32_0 : i32, i32
  }
  func.func @transform_2(%arg0: i32) -> (i32, i32) {
    %c0_i32 = arith.constant 0 : i32
    %c0_i32_0 = arith.constant 0 : i32
    %c0_i32_1 = arith.constant 0 : i32
    return %c0_i32, %c0_i32_0 : i32, i32
  }
  func.func @transform_3(%arg0: i32) -> (i32, i32, i32) {
    %c0_i32 = arith.constant 0 : i32
    %c0_i32_0 = arith.constant 0 : i32
    %c0_i32_1 = arith.constant 0 : i32
    return %arg0, %c0_i32, %c0_i32_0 : i32, i32, i32
  }
}

</mosaic_0001>

<bundles_post_ra>
// kernel: tpu_custom_call.1
= control target key start
LH: loop header
LB: loop body
LE: loop exit
PB: predicated region body
PF: predicated region fallthrough
CT: control target
= control target key end

     0   :  { %s566_s12 = smov 0   ;;  %s636_s0 = inlined_call_operand.vmem [shape: f32[2,32,16], index: 0, kind: input, shape index: {}]   ;;  %s637_s1 = inlined_call_operand.vmem [shape: f32[2,32], index: 1, kind: input, shape index: {}]   ;;  %s638_s2 = inlined_call_operand.vmem [shape: f32[32,2], index: 2, kind: input, shape index: {}]   ;;  %s639_s3 = inlined_call_operand.vmem [shape: f32[2,32,16], index: 3, kind: output, shape index: {}]  }
   0x1 LB: > { %s479_s13 = sadd.s32 4294967295, %s542_s12   ;;  %p483_p0 = scmp.ge.s32.totalorder %s542_s12, 1  ;;  %s542_s12 = sphi %s566_s12, %s13_s12  }
   0x2   : > { %p137_p1 = scmp.lt.s32.totalorder %s542_s12, 3 }
   0x4   : > { %p138_p2 = pnand %p483_p0, %p137_p1 }
   0x5   : > { %p161_p3 = scmp.lt.s32.totalorder (!%p138_p2), %s479_s13, 1 }
   0x6   : > { %141 = sbr.rel (%p138_p2) target bundleno = 715 (0x2cb), region = 32 }
   0xb   : > { %s641_s13 = smov (!%p161_p3, %s479_s13), 1  ;;  %vm175_vm0 = vcmask 130048   ;;  %v544_v8 = vmov 0.0   ;;  %v193_v9 = vld [vmem:[%s637_s1] sm:$0x3]  ;;  %vm229_vm1 = vcmask 261120   ;;  %v202_v13 = vlaneseq }
   0xc   : > { %s497_s14 = sshll.u32 %s641_s13, 5  ;;  %506 = vmatprep.subr.mxu0 %v544_v8  ;;  %511 = vmatprep.subr.mxu1 %v544_v8  ;;  %vm545_vm2 = vmmov 0   ;;  %v197_v10 = vld [vmem:[%s638_s2 + $0x18] sm:$0xff]  ;;  %vm306_vm3 = vcmask 15360   ;;  %v196_v11 = vld [vmem:[%s638_s2 + $0x10] sm:$0xff]  ;;  %v195_v12 = vld [vmem:[%s638_s2 + $0x8] sm:$0xff] }
   0xd   : > { %s165_s17 = scalar_lea.vmem %s636_s0, %s497_s14  ;;  %507 = vmatpush3.xpose.msk.msra.mxu0 %vm229_vm1, %v193_v9  ;;  %508 = vmatprep.mubr.msk.f32.mxu0 %vm545_vm2, %v544_v8  ;;  %v203_v14 = vand.u32 127, %v202_v13  ;;  %v205_v15 = vshrl.u32 %v202_v13, 7  ;;  %vm213_vm4 = vcmask 130112   ;;  %vm220_vm5 = vcmask 195712   ;;  %v194_v38 = vld [vmem:[%s638_s2] sm:$0xff]  ;;  %s170_s30 = scalar_lea.vmem %s639_s3, %s497_s14 }
   0xe   : > { %v582_v0 = vld [vmem:[%s165_s17] sm:$0xff]  ;;  %v584_v1 = vld [vmem:[%s165_s17 + $0x10] sm:$0xff]  ;;  %v586_v2 = vld [vmem:[%s165_s17 + $0x8] sm:$0xff]  ;;  %519 = vmatprep.mubr.msk.f32.mxu1 %vm545_vm2, %v544_v8  ;;  %512 = vmatpush3.xpose.msk.msra.mxu1 %vm306_vm3, %v197_v10  ;;  %vm227_vm6 = vcmask 261312  }
   0xf   : > { %v176_v3 = vsel %vm175_vm0, %v582_v0, 0.0  ;;  %v182_v4 = vsel %vm175_vm0, %v584_v1, 0.0  ;;  %v592_v5 = vld [vmem:[%s165_s17 + $0x18] sm:$0xff]  ;;  %v179_v6 = vsel %vm175_vm0, %v586_v2, 0.0  ;;  %513 = vmatprep.subr.mxu1 %v544_v8  ;;  %v208_v16 = vadd.s32 4294967288, %v203_v14 }
  0x10   : > { %177 = vadd.xlane.f32.xlu0 %v176_v3  ;;  %183 = vadd.xlane.f32.xlu1 %v182_v4  ;;  %v185_v7 = vsel %vm175_vm0, %v592_v5, 0.0  ;;  %v222_v17 = vadd.s32 4294967272, %v203_v14  ;;  %v215_v19 = vadd.s32 4294967280, %v203_v14  ;;  %v206_v21 = vsub.s32 %v203_v14, %v205_v15 }
  0x11   : > { %v211_v23 = vsub.s32 %v208_v16, %v205_v15  ;;  %v399_v48 = vsub.s32 0, %v205_v15 }
  0x12   : > { %514 = vmatpush3.xpose.msk.msra.mxu1 %vm306_vm3, %v196_v11  ;;  %v225_v24 = vsub.s32 %v222_v17, %v205_v15  ;;  %v218_v25 = vsub.s32 %v215_v19, %v205_v15 }
  0x13   : > { %515 = vmatprep.subr.mxu1 %v544_v8 }
  0x14   : > { %180 = vadd.xlane.f32.xlu0 %v179_v6  ;;  %186 = vadd.xlane.f32.xlu1 %v185_v7 }
  0x16   : > { %516 = vmatpush3.xpose.msk.msra.mxu1 %vm306_vm3, %v195_v12 }
  0x17   : > { %517 = vmatprep.subr.mxu1 %v544_v8 }
  0x1a   : > { %518 = vmatpush3.xpose.msk.msra.mxu1 %vm306_vm3, %v194_v38 }
  0x99   : > { %v178_v18 = vpop.xlane.xlu0 %177  ;;  %v184_v20 = vpop.xlane.xlu1 %183 }
  0x9a   : > { %v189_v22 = vmul.f32 0.0625, %v178_v18  ;;  %v191_v26 = vmul.f32 0.0625, %v184_v20 }
  0x9c   : > { %v207_v31 = vrot.slane %v189_v22, %v206_v21  ;;  %v219_v34 = vrot.slane %v191_v26, %v218_v25 }
  0x9d   : > { %v181_v27 = vpop.xlane.xlu0 %180  ;;  %v187_v28 = vpop.xlane.xlu1 %186 }
  0x9e   : > { %v190_v29 = vmul.f32 0.0625, %v181_v27  ;;  %v192_v30 = vmul.f32 0.0625, %v187_v28 }
  0xa0   : > { %v212_v32 = vrot.slane %v190_v29, %v211_v23  ;;  %v226_v33 = vrot.slane %v192_v30, %v225_v24 }
  0xa2   : > { %v214_v35 = vsel %vm213_vm4, %v212_v32, %v207_v31 }
  0xa3   : > { %v221_v36 = vsel %vm220_vm5, %v219_v34, %v214_v35 }
  0xa4   : > { %v228_v37 = vsel %vm227_vm6, %v226_v33, %v221_v36 }
  0xa5   : > { %509 = vmatmul.mubr.msk.f32.vlgmr.msra.gmra.mxu0 %vm229_vm1, %v228_v37 }
 0x165   : > { %v301_v39 = vpop.f32.mrf.mxu0 }
 0x166   : > { %v305_v40 = vmax.f32 %v301_v39, 0.0 }
 0x167   : > { %v510_v41 = vpop.f32.mrf.mxu0 }
 0x168   : > { %520 = vmatmul.mubr.msk.f32.vlgmr.msra.gmra.mxu1 %vm306_vm3, %v305_v40 }
 0x228   : > { %v388_v42 = vpop.f32.mrf.mxu1 }
 0x229   : > { %v392_v43 = vsub.f32 0.0, %v388_v42 }
 0x22a   : > { %v521_v44 = vpop.f32.mrf.mxu1 }
 0x22b   : > { %v393_v45 = vmul.f32 1.442695, %v392_v43 }
 0x22d   : > { %532 = vpow2.f32 %v393_v45 }
 0x23a   : > { %v533_v46 = vpop.eup %532 }
 0x23b   : > { %v395_v47 = vadd.f32 1.0, %v533_v46 }
 0x23d   : > { %534 = vrcp.f32 %v395_v47 }
 0x24a   : > { %v535_v49 = vpop.eup %534 }
 0x24b   : > { %v400_v50 = vrot.slane %v535_v49, %v399_v48 }
 0x24d   : > { %406 = vbcast.lane.b32.xlu1 %v400_v50, 264  ;;  %402 = vbcast.lane.b32.xlu0 %v400_v50, 256 }
 0x251   : > { %410 = vbcast.lane.b32.xlu1 %v400_v50, 272 }
 0x255   : > { %414 = vbcast.lane.b32.xlu1 %v400_v50, 280 }
 0x2bf   : > { %v407_v51 = vpop.permute.xlu1 %406  ;;  %v403_v52 = vpop.permute.xlu0 %402 }
 0x2c0   : > { %v417_v53 = vmul.f32 %v407_v51, %v586_v2  ;;  %v416_v54 = vmul.f32 %v403_v52, %v582_v0 }
 0x2c2   : > { %421 = vst.msk [vmem:[%s170_s30 + $0x8] sm:$0xff] %vm175_vm0, %v417_v53  ;;  %420 = vst.msk [vmem:[%s170_s30] sm:$0xff] %vm175_vm0, %v416_v54 }
 0x2c3   : > { %v411_v55 = vpop.permute.xlu1 %410 }
 0x2c4   : > { %v418_v56 = vmul.f32 %v411_v55, %v584_v1 }
 0x2c6   : > { %422 = vst.msk [vmem:[%s170_s30 + $0x10] sm:$0xff] %vm175_vm0, %v418_v56 }
 0x2c7   : > { %v415_v57 = vpop.permute.xlu1 %414 }
 0x2c8   : > { %v419_v58 = vmul.f32 %v415_v57, %v592_v5 }
 0x2ca   : > { %423 = vst.msk [vmem:[%s170_s30 + $0x18] sm:$0xff] %vm175_vm0, %v419_v58 }
 0x2cb PF: > { %s13_s12 = sadd.s32 1, %s542_s12  }
 0x2cc   : > { %p10_p4 = scmp.ge.s32.totalorder %s13_s12, 4  }
 0x2ce   :  { %12 = sbr.rel (!%p10_p4) target bundleno = 1 (0x1), region = 62 }

</bundles_post_ra>
